<compile_context>
chip_gen: v7x
topology: tpu7x:2x2x1
jax: 0.10.0
libtpu: 0.0.40
codegen_flags: <defaults>
</compile_context>

<pallas_src>
import jax
import jax.numpy as jnp
import numpy as np
from jax.experimental import pallas as pl
from jax.experimental.pallas import tpu as pltpu

# ----------------------------- hyper-parameters -----------------------------
HPS = dict(
    dim_data=16,
    prosody_embedding_dim=32,
    batch_size=2,
    style_embedding_dim=16,        # lstm_dim
    nb_style_parameters=8,
    use_style_input=False,
    bias_encoder_with_hc=False,
    bias_encoder_with_entry=True,
    encoder_embedding_dim=32,
    encoder_lstm_hidden_dim=16,
    prosody_n_convolutions=2,
    prosody_conv_dim_in=[1, 4],
    prosody_conv_dim_out=[4, 4],
    prosody_conv_kernel=3,
    prosody_conv_stride=[2, 2],
)
BN_EPS = 1e-5


def _spec(shape):
    # full-array block, trivial grid of size 1
    return pl.BlockSpec(shape, lambda i: (0,) * len(shape))


# ----------------------------- fused Pallas kernel ---------------------------
def fused_style_encoder_kernel(x_ref, mw_ref, svw_ref, wxg_ref, bxg_ref,
                               whh_ref, wproj_ref, bproj_ref, wentry_ref,
                               out_ref):
    B = x_ref.shape[0]
    H2 = whh_ref.shape[0]                # 2H  (fwd|bwd packed state width)
    G8 = whh_ref.shape[1]                # 8H  (both directions' gate width)
    TF = wxg_ref.shape[0]                # T*F (LSTM input features, all steps)
    split = mw_ref.shape[1] - TF         # C1*N1 (conv1 output width)
    T = wxg_ref.shape[1] // G8

    # conv1 + BN1 + ReLU  (lowered to one lane-dense matmul, BN/bias folded)
    a1 = jnp.maximum(
        jnp.dot(x_ref[...], mw_ref[:, :split],
                preferred_element_type=jnp.float32) + svw_ref[:, :split], 0.0)

    # conv2 + BN2 + ReLU  (columns already ordered (t, c2, w2) == LSTM order)
    a2 = jnp.maximum(
        jnp.dot(a1, mw_ref[:, split:],
                preferred_element_type=jnp.float32) + svw_ref[:, split:], 0.0)

    # LSTM input projection for both directions and all timesteps: ONE matmul.
    xg = jnp.dot(a2, wxg_ref[...],
                 preferred_element_type=jnp.float32) + bxg_ref[...]   # (B, T*8H)

    whh = whh_ref[...]                                                # (2H, 8H)
    h = jnp.zeros((B, H2), jnp.float32)      # [h_f | h_b]
    c = jnp.zeros((B, H2), jnp.float32)      # [c_f | c_b]

    # Packed bidirectional recurrence: slab s = [fwd step s | bwd step T-1-s],
    # gate layout per slab: [i_f,i_b,f_f,f_b,g_f,g_b,o_f,o_b] (each H wide).
    for s in range(T):
        g_all = xg[:, s * G8:(s + 1) * G8] + jnp.dot(
            h, whh, preferred_element_type=jnp.float32)               # (B, 8H)
        sg = jax.nn.sigmoid(g_all)
        tg = jnp.tanh(g_all)
        c = sg[:, H2:2 * H2] * c + sg[:, 0:H2] * tg[:, 2 * H2:3 * H2]
        h = sg[:, 3 * H2:4 * H2] * jnp.tanh(c)

    # hc in packed order [h_f | h_b | c_f | c_b]; wproj rows pre-permuted to match.
    hc = jnp.concatenate([h, c], axis=1)                              # (B, 4H)
    style = jnp.tanh(jnp.dot(hc, wproj_ref[...],
                             preferred_element_type=jnp.float32) + bproj_ref[...])
    c0 = jnp.dot(style, wentry_ref[...], preferred_element_type=jnp.float32)
    out_ref[...] = jnp.concatenate([style, c0], axis=1)               # one slab


# ------------------------------- JAX glue ------------------------------------
def _conv_selection(in_h, in_w, k, stride, pad, out_h, out_w):
    """0/1 tap-selection tensor: S[di, dj, i*out_w + j, r*in_w + s] = 1 iff
    (r, s) = (stride*i + di - pad, stride*j + dj - pad) is inside the input."""
    S = np.zeros((k, k, out_h * out_w, in_h * in_w), np.float32)
    for di in range(k):
        for dj in range(k):
            for i in range(out_h):
                r = stride * i + di - pad
                if r < 0 or r >= in_h:
                    continue
                for j in range(out_w):
                    s = stride * j + dj - pad
                    if s < 0 or s >= in_w:
                        continue
                    S[di, dj, i * out_w + j, r * in_w + s] = 1.0
    return S


def _out_size(n, k, stride, pad):
    return (n - k + 2 * pad) // stride + 1


def style_encoder_forward(spe, spe_lg, hps, params):
    # spe: (B, T_in, dim_data); spe_lg is unused by the reference forward.
    del spe_lg
    B, T_in, D = spe.shape
    k = hps['prosody_conv_kernel']
    s1, s2 = hps['prosody_conv_stride']
    cp1, cp2 = params['convs']
    C1 = cp1['w'].shape[0]
    C2 = cp2['w'].shape[0]
    OH1, OW1 = _out_size(T_in, k, s1, 1), _out_size(D, k, s1, 1)
    OH2, OW2 = _out_size(OH1, k, s2, 1), _out_size(OW1, k, s2, 1)
    N0, N1 = T_in * D, OH1 * OW1
    T, F = OH2, C2 * OW2

    H = hps['style_embedding_dim']
    P = hps['nb_style_parameters']
    E = hps['encoder_embedding_dim']

    # ----- weight-only preprocessing: conv -> matmul, BatchNorm/bias folding -----
    # conv1 (Cin=1): M1[r*D+s, c1*N1 + i1*OW1 + j1] = w1[c1, 0, di, dj] at matching taps
    S1 = jnp.asarray(_conv_selection(T_in, D, k, s1, 1, OH1, OW1))      # (k,k,N1,N0)
    m1 = jnp.einsum('cab,abop->cop', cp1['w'][:, 0], S1)                # (C1,N1,N0)
    m1 = m1.transpose(2, 0, 1).reshape(N0, C1 * N1)                     # (N0, C1*N1)
    scale1 = cp1['gamma'] * jax.lax.rsqrt(cp1['var'] + BN_EPS)
    sv1c = (cp1['b'] - cp1['mean']) * scale1 + cp1['beta']
    m1 = m1 * jnp.repeat(scale1, N1)[None, :]
    sv1 = jnp.repeat(sv1c, N1)[None, :]                                 # (1, C1*N1)

    # conv2: output column order (t=i2, c2, j2) == LSTM per-step feature order
    S2 = jnp.asarray(_conv_selection(OH1, OW1, k, s2, 1, OH2, OW2)
                     .reshape(k, k, OH2, OW2, N1))                      # (k,k,OH2,OW2,N1)
    m2 = jnp.einsum('ocab,abijp->ocijp', cp2['w'], S2)                  # (C2,C1,OH2,OW2,N1)
    m2 = m2.transpose(1, 4, 2, 0, 3).reshape(C1 * N1, T * F)            # (C1*N1, T*F)
    scale2 = cp2['gamma'] * jax.lax.rsqrt(cp2['var'] + BN_EPS)
    sv2c = (cp2['b'] - cp2['mean']) * scale2 + cp2['beta']
    m2 = m2 * jnp.tile(jnp.repeat(scale2, OW2), OH2)[None, :]
    sv2 = jnp.tile(jnp.repeat(sv2c, OW2), OH2)[None, :]                 # (1, T*F)

    # Pack both conv matrices / bias vectors into single operands (fewer DMAs).
    mw = jnp.concatenate([m1, m2], axis=1)                              # (N0, C1*N1+T*F)
    svw = jnp.concatenate([sv1, sv2], axis=1)                           # (1,  C1*N1+T*F)

    # ----- LSTM weight packing ---------------------------------------------------
    lp = params['lstm']
    wih_f, wih_b = lp['wih_f'], lp['wih_b']                             # (F, 4H)
    b_f, b_b = lp['b_f'], lp['b_b']                                     # (1, 4H)
    whh_f, whh_b = lp['whh_f'], lp['whh_b']                             # (H, 4H)

    # Wxg: (T*F, T*8H).  Slab s columns = [fwd gates of step s | bwd gates of
    # step T-1-s], gate-interleaved [i_f,i_b,f_f,f_b,g_f,g_b,o_f,o_b].
    slabs = []
    for s in range(T):
        cols = []
        for g in range(4):
            col_f = jnp.zeros((T * F, H), jnp.float32).at[
                s * F:(s + 1) * F].set(wih_f[:, g * H:(g + 1) * H])
            col_b = jnp.zeros((T * F, H), jnp.float32).at[
                (T - 1 - s) * F:(T - s) * F].set(wih_b[:, g * H:(g + 1) * H])
            cols += [col_f, col_b]
        slabs.append(jnp.concatenate(cols, axis=1))                     # (T*F, 8H)
    wxg = jnp.concatenate(slabs, axis=1)                                # (T*F, T*8H)

    b_slab = jnp.concatenate(
        [jnp.concatenate([b_f[:, g * H:(g + 1) * H], b_b[:, g * H:(g + 1) * H]],
                         axis=1) for g in range(4)], axis=1)            # (1, 8H)
    bxg = jnp.tile(b_slab, (1, T))                                      # (1, T*8H)

    # Block-diagonal recurrent weight in the same interleaved gate layout.
    whh_cat = jnp.zeros((2 * H, 8 * H), jnp.float32)
    for g in range(4):
        whh_cat = whh_cat.at[0:H, g * 2 * H:g * 2 * H + H].set(
            whh_f[:, g * H:(g + 1) * H])
        whh_cat = whh_cat.at[H:2 * H, g * 2 * H + H:(g + 1) * 2 * H].set(
            whh_b[:, g * H:(g + 1) * H])

    # wproj rows permuted for packed hc order [h_f | h_b | c_f | c_b].
    wp = params['wproj']                                                # (4H, P)
    wproj_perm = jnp.concatenate(
        [wp[0:H], wp[2 * H:3 * H], wp[H:2 * H], wp[3 * H:4 * H]], axis=0)

    x = spe.reshape(B, N0)                                              # free reshape
    W = C1 * N1 + T * F

    out = pl.pallas_call(
        fused_style_encoder_kernel,
        grid=(1,),
        in_specs=[_spec((B, N0)),
                  _spec((N0, W)), _spec((1, W)),
                  _spec((T * F, T * 8 * H)), _spec((1, T * 8 * H)),
                  _spec((2 * H, 8 * H)),
                  _spec((4 * H, P)), _spec((1, P)), _spec((P, E))],
        out_specs=_spec((B, P + E)),
        out_shape=jax.ShapeDtypeStruct((B, P + E), jnp.float32),
        compiler_params=pltpu.CompilerParams(dimension_semantics=("arbitrary",)),
    )(x, mw, svw, wxg, bxg, whh_cat, wproj_perm, params['bproj'], params['wentry'])

    style = out[:, :P]
    c0 = out[:, P:P + E].reshape(B, 1, E)
    h0 = jnp.zeros((2, B, hps['encoder_lstm_hidden_dim']), jnp.float32)
    return (c0, h0), style


# -------------------------- deterministic parameters --------------------------
def init_params(key, hps):
    keys = iter(jax.random.split(key, 64))
    params = {'convs': []}
    n_out = hps['dim_data']
    k = hps['prosody_conv_kernel']
    for i in range(hps['prosody_n_convolutions']):
        cin = hps['prosody_conv_dim_in'][i]
        cout = hps['prosody_conv_dim_out'][i]
        params['convs'].append(dict(
            w=0.2 * jax.random.normal(next(keys), (cout, cin, k, k), jnp.float32),
            b=0.1 * jax.random.normal(next(keys), (cout,), jnp.float32),
            gamma=1.0 + 0.1 * jax.random.normal(next(keys), (cout,), jnp.float32),
            beta=0.1 * jax.random.normal(next(keys), (cout,), jnp.float32),
            mean=0.05 * jax.random.normal(next(keys), (cout,), jnp.float32),
            var=jnp.abs(1.0 + 0.1 * jax.random.normal(next(keys), (cout,), jnp.float32)),
        ))
        n_out = (n_out - k + 2 * 1) // hps['prosody_conv_stride'][i] + 1
    F = hps['prosody_conv_dim_out'][-1] * n_out
    H = hps['style_embedding_dim']
    P = hps['nb_style_parameters']
    E = hps['encoder_embedding_dim']
    params['lstm'] = dict(
        wih_f=0.2 * jax.random.normal(next(keys), (F, 4 * H), jnp.float32),
        whh_f=0.2 * jax.random.normal(next(keys), (H, 4 * H), jnp.float32),
        b_f=0.1 * jax.random.normal(next(keys), (1, 4 * H), jnp.float32),
        wih_b=0.2 * jax.random.normal(next(keys), (F, 4 * H), jnp.float32),
        whh_b=0.2 * jax.random.normal(next(keys), (H, 4 * H), jnp.float32),
        b_b=0.1 * jax.random.normal(next(keys), (1, 4 * H), jnp.float32),
    )
    params['wproj'] = 0.2 * jax.random.normal(next(keys), (4 * H, P), jnp.float32)
    params['bproj'] = 0.1 * jax.random.normal(next(keys), (1, P), jnp.float32)
    params['wentry'] = 0.001 * jax.random.uniform(next(keys), (P, E), jnp.float32,
                                                  minval=-1.0, maxval=1.0)
    return params


# ------------------------------ pure-JAX reference ----------------------------
def ref_forward(spe, hps, params):
    B = spe.shape[0]
    x = spe.reshape(B, 1, -1, hps['dim_data'])
    for i, cp in enumerate(params['convs']):
        s = hps['prosody_conv_stride'][i]
        y = jax.lax.conv_general_dilated(
            x, cp['w'], window_strides=(s, s), padding=((1, 1), (1, 1)),
            dimension_numbers=('NCHW', 'OIHW', 'NCHW'))
        y = y + cp['b'][None, :, None, None]
        scale = cp['gamma'] / jnp.sqrt(cp['var'] + BN_EPS)
        shift = cp['beta'] - cp['mean'] * scale
        x = jnp.maximum(y * scale[None, :, None, None] + shift[None, :, None, None], 0.0)
    x = x.transpose(0, 2, 1, 3)
    T = x.shape[1]
    x = x.reshape(B, T, -1)

    def lstm_dir(xs, wih, whh, b, reverse):
        H = whh.shape[0]
        h = jnp.zeros((xs.shape[0], H)); c = jnp.zeros((xs.shape[0], H))
        steps = range(xs.shape[1] - 1, -1, -1) if reverse else range(xs.shape[1])
        for t in steps:
            gates = xs[:, t, :] @ wih + h @ whh + b
            i = jax.nn.sigmoid(gates[:, :H]); f = jax.nn.sigmoid(gates[:, H:2 * H])
            g = jnp.tanh(gates[:, 2 * H:3 * H]); o = jax.nn.sigmoid(gates[:, 3 * H:])
            c = f * c + i * g; h = o * jnp.tanh(c)
        return h, c

    lp = params['lstm']
    hf, cf = lstm_dir(x, lp['wih_f'], lp['whh_f'], lp['b_f'], False)
    hb, cb = lstm_dir(x, lp['wih_b'], lp['whh_b'], lp['b_b'], True)
    hc = jnp.concatenate([hf, cf, hb, cb], axis=-1)
    style = jnp.tanh(hc @ params['wproj'] + params['bproj'])
    c0 = (style @ params['wentry']).reshape(B, 1, hps['encoder_embedding_dim'])
    h0 = jnp.zeros((2, B, hps['encoder_lstm_hidden_dim']))
    return (c0, h0), style


# ----------------------------------- main -------------------------------------
if __name__ == "__main__":
    key = jax.random.PRNGKey(0)
    kx, kl, kp = jax.random.split(key, 3)
    B = HPS['batch_size']
    T_in = 16
    spe = jax.random.normal(kx, (B, T_in, HPS['dim_data']), jnp.float32)
    spe_lg = jnp.full((B,), T_in, jnp.int32)   # unused by forward (signature parity)
    params = init_params(kp, HPS)

    fwd = jax.jit(lambda s, lg, p: style_encoder_forward(s, lg, HPS, p))
    (c0, h0), style = fwd(spe, spe_lg, params)
    jax.block_until_ready((c0, h0, style))

    (c0_r, h0_r), style_r = ref_forward(spe, HPS, params)
    np.testing.assert_allclose(np.asarray(style), np.asarray(style_r), rtol=5e-3, atol=5e-3)
    np.testing.assert_allclose(np.asarray(c0), np.asarray(c0_r), rtol=5e-3, atol=5e-3)
    np.testing.assert_allclose(np.asarray(h0), np.asarray(h0_r), rtol=0, atol=0)

    print("KERNEL_OK")
</pallas_src>

<mosaic_0001>
module attributes {stable_mosaic.version = 11 : i64} {
  func.func @fused_style_encoder_kernel(%arg0: i32, %arg1: memref<2x256xf32, #tpu.memory_space<vmem>>, %arg2: memref<256x320xf32, #tpu.memory_space<vmem>>, %arg3: memref<1x320xf32, #tpu.memory_space<vmem>>, %arg4: memref<64x512xf32, #tpu.memory_space<vmem>>, %arg5: memref<1x512xf32, #tpu.memory_space<vmem>>, %arg6: memref<32x128xf32, #tpu.memory_space<vmem>>, %arg7: memref<64x8xf32, #tpu.memory_space<vmem>>, %arg8: memref<1x8xf32, #tpu.memory_space<vmem>>, %arg9: memref<8x32xf32, #tpu.memory_space<vmem>>, %arg10: memref<2x40xf32, #tpu.memory_space<vmem>>) attributes {dimension_semantics = [#tpu.dimension_semantics<arbitrary>], iteration_bounds = array<i64: 1>, scalar_prefetch = 0 : i64, scratch_operands = 0 : i64, tpu.core_type = #tpu.core_type<tc>, window_params = [{pipeline_mode = #tpu.pipeline_mode<synchronous>, transform_indices = @transform_0, window_bounds = array<i64: 2, 256>}, {pipeline_mode = #tpu.pipeline_mode<synchronous>, transform_indices = @transform_1, window_bounds = array<i64: 256, 320>}, {pipeline_mode = #tpu.pipeline_mode<synchronous>, transform_indices = @transform_2, window_bounds = array<i64: 1, 320>}, {pipeline_mode = #tpu.pipeline_mode<synchronous>, transform_indices = @transform_3, window_bounds = array<i64: 64, 512>}, {pipeline_mode = #tpu.pipeline_mode<synchronous>, transform_indices = @transform_4, window_bounds = array<i64: 1, 512>}, {pipeline_mode = #tpu.pipeline_mode<synchronous>, transform_indices = @transform_5, window_bounds = array<i64: 32, 128>}, {pipeline_mode = #tpu.pipeline_mode<synchronous>, transform_indices = @transform_6, window_bounds = array<i64: 64, 8>}, {pipeline_mode = #tpu.pipeline_mode<synchronous>, transform_indices = @transform_7, window_bounds = array<i64: 1, 8>}, {pipeline_mode = #tpu.pipeline_mode<synchronous>, transform_indices = @transform_8, window_bounds = array<i64: 8, 32>}, {pipeline_mode = #tpu.pipeline_mode<synchronous>, transform_indices = @transform_9, window_bounds = array<i64: 2, 40>}]} {
    %c0 = arith.constant 0 : index
    %c0_0 = arith.constant 0 : index
    %0 = vector.load %arg1[%c0, %c0_0] : memref<2x256xf32, #tpu.memory_space<vmem>>, vector<2x256xf32>
    %c0_1 = arith.constant 0 : index
    %c0_2 = arith.constant 0 : index
    %1 = vector.load %arg2[%c0_1, %c0_2] : memref<256x320xf32, #tpu.memory_space<vmem>>, vector<256x256xf32>
    %cst = arith.constant dense<0.000000e+00> : vector<2x256xf32>
    %2 = tpu.matmul %0, %1, %cst {dimension_numbers = #tpu.dot_dimension_numbers<[1], [0], [0], [1], [0, 0, 1, 1], [], []>} : vector<2x256xf32>, vector<256x256xf32>, vector<2x256xf32> -> vector<2x256xf32>
    %c0_3 = arith.constant 0 : index
    %c0_4 = arith.constant 0 : index
    %3 = vector.load %arg3[%c0_3, %c0_4] : memref<1x320xf32, #tpu.memory_space<vmem>>, vector<1x256xf32>
    %4 = vector.broadcast %3 : vector<1x256xf32> to vector<2x256xf32>
    %5 = arith.addf %2, %4 : vector<2x256xf32>
    %cst_5 = arith.constant 0.000000e+00 : f32
    %6 = vector.broadcast %cst_5 : f32 to vector<2x256xf32>
    %7 = arith.maximumf %5, %6 : vector<2x256xf32>
    %c0_6 = arith.constant 0 : index
    %c256 = arith.constant 256 : index
    %8 = vector.load %arg2[%c0_6, %c256] : memref<256x320xf32, #tpu.memory_space<vmem>>, vector<256x64xf32>
    %cst_7 = arith.constant dense<0.000000e+00> : vector<2x64xf32>
    %9 = tpu.matmul %7, %8, %cst_7 {dimension_numbers = #tpu.dot_dimension_numbers<[1], [0], [0], [1], [0, 0, 1, 1], [], []>} : vector<2x256xf32>, vector<256x64xf32>, vector<2x64xf32> -> vector<2x64xf32>
    %c0_8 = arith.constant 0 : index
    %c256_9 = arith.constant 256 : index
    %10 = vector.load %arg3[%c0_8, %c256_9] : memref<1x320xf32, #tpu.memory_space<vmem>>, vector<1x64xf32>
    %11 = vector.broadcast %10 : vector<1x64xf32> to vector<2x64xf32>
    %12 = arith.addf %9, %11 : vector<2x64xf32>
    %cst_10 = arith.constant 0.000000e+00 : f32
    %13 = vector.broadcast %cst_10 : f32 to vector<2x64xf32>
    %14 = arith.maximumf %12, %13 : vector<2x64xf32>
    %c0_11 = arith.constant 0 : index
    %c0_12 = arith.constant 0 : index
    %15 = vector.load %arg4[%c0_11, %c0_12] : memref<64x512xf32, #tpu.memory_space<vmem>>, vector<64x512xf32>
    %cst_13 = arith.constant dense<0.000000e+00> : vector<2x512xf32>
    %16 = tpu.matmul %14, %15, %cst_13 {dimension_numbers = #tpu.dot_dimension_numbers<[1], [0], [0], [1], [0, 0, 1, 1], [], []>} : vector<2x64xf32>, vector<64x512xf32>, vector<2x512xf32> -> vector<2x512xf32>
    %c0_14 = arith.constant 0 : index
    %c0_15 = arith.constant 0 : index
    %17 = vector.load %arg5[%c0_14, %c0_15] : memref<1x512xf32, #tpu.memory_space<vmem>>, vector<1x512xf32>
    %18 = vector.broadcast %17 : vector<1x512xf32> to vector<2x512xf32>
    %19 = arith.addf %16, %18 : vector<2x512xf32>
    %c0_16 = arith.constant 0 : index
    %c0_17 = arith.constant 0 : index
    %20 = vector.load %arg6[%c0_16, %c0_17] : memref<32x128xf32, #tpu.memory_space<vmem>>, vector<32x128xf32>
    %cst_18 = arith.constant 0.000000e+00 : f32
    %21 = vector.broadcast %cst_18 : f32 to vector<2x32xf32>
    %cst_19 = arith.constant 0.000000e+00 : f32
    %22 = vector.broadcast %cst_19 : f32 to vector<2x32xf32>
    %23 = vector.extract_strided_slice %19 {offsets = [0, 0], sizes = [2, 128], strides = [1, 1]} : vector<2x512xf32> to vector<2x128xf32>
    %cst_20 = arith.constant dense<0.000000e+00> : vector<2x128xf32>
    %24 = tpu.matmul %21, %20, %cst_20 {dimension_numbers = #tpu.dot_dimension_numbers<[1], [0], [0], [1], [0, 0, 1, 1], [], []>} : vector<2x32xf32>, vector<32x128xf32>, vector<2x128xf32> -> vector<2x128xf32>
    %25 = arith.addf %23, %24 : vector<2x128xf32>
    %26 = arith.negf %25 : vector<2x128xf32>
    %27 = math.exp %26 : vector<2x128xf32>
    %cst_21 = arith.constant 1.000000e+00 : f32
    %28 = vector.broadcast %cst_21 : f32 to vector<2x128xf32>
    %29 = arith.addf %28, %27 : vector<2x128xf32>
    %30 = arith.divf %28, %29 : vector<2x128xf32>
    %31 = math.tanh %25 : vector<2x128xf32>
    %32 = vector.extract_strided_slice %30 {offsets = [0, 32], sizes = [2, 32], strides = [1, 1]} : vector<2x128xf32> to vector<2x32xf32>
    %33 = arith.mulf %32, %22 : vector<2x32xf32>
    %34 = vector.extract_strided_slice %30 {offsets = [0, 0], sizes = [2, 32], strides = [1, 1]} : vector<2x128xf32> to vector<2x32xf32>
    %35 = vector.extract_strided_slice %31 {offsets = [0, 64], sizes = [2, 32], strides = [1, 1]} : vector<2x128xf32> to vector<2x32xf32>
    %36 = arith.mulf %34, %35 : vector<2x32xf32>
    %37 = arith.addf %33, %36 : vector<2x32xf32>
    %38 = vector.extract_strided_slice %30 {offsets = [0, 96], sizes = [2, 32], strides = [1, 1]} : vector<2x128xf32> to vector<2x32xf32>
    %39 = math.tanh %37 : vector<2x32xf32>
    %40 = arith.mulf %38, %39 : vector<2x32xf32>
    %41 = vector.extract_strided_slice %19 {offsets = [0, 128], sizes = [2, 128], strides = [1, 1]} : vector<2x512xf32> to vector<2x128xf32>
    %cst_22 = arith.constant dense<0.000000e+00> : vector<2x128xf32>
    %42 = tpu.matmul %40, %20, %cst_22 {dimension_numbers = #tpu.dot_dimension_numbers<[1], [0], [0], [1], [0, 0, 1, 1], [], []>} : vector<2x32xf32>, vector<32x128xf32>, vector<2x128xf32> -> vector<2x128xf32>
    %43 = arith.addf %41, %42 : vector<2x128xf32>
    %44 = arith.negf %43 : vector<2x128xf32>
    %45 = math.exp %44 : vector<2x128xf32>
    %cst_23 = arith.constant 1.000000e+00 : f32
    %46 = vector.broadcast %cst_23 : f32 to vector<2x128xf32>
    %47 = arith.addf %46, %45 : vector<2x128xf32>
    %48 = arith.divf %46, %47 : vector<2x128xf32>
    %49 = math.tanh %43 : vector<2x128xf32>
    %50 = vector.extract_strided_slice %48 {offsets = [0, 32], sizes = [2, 32], strides = [1, 1]} : vector<2x128xf32> to vector<2x32xf32>
    %51 = arith.mulf %50, %37 : vector<2x32xf32>
    %52 = vector.extract_strided_slice %48 {offsets = [0, 0], sizes = [2, 32], strides = [1, 1]} : vector<2x128xf32> to vector<2x32xf32>
    %53 = vector.extract_strided_slice %49 {offsets = [0, 64], sizes = [2, 32], strides = [1, 1]} : vector<2x128xf32> to vector<2x32xf32>
    %54 = arith.mulf %52, %53 : vector<2x32xf32>
    %55 = arith.addf %51, %54 : vector<2x32xf32>
    %56 = vector.extract_strided_slice %48 {offsets = [0, 96], sizes = [2, 32], strides = [1, 1]} : vector<2x128xf32> to vector<2x32xf32>
    %57 = math.tanh %55 : vector<2x32xf32>
    %58 = arith.mulf %56, %57 : vector<2x32xf32>
    %59 = vector.extract_strided_slice %19 {offsets = [0, 256], sizes = [2, 128], strides = [1, 1]} : vector<2x512xf32> to vector<2x128xf32>
    %cst_24 = arith.constant dense<0.000000e+00> : vector<2x128xf32>
    %60 = tpu.matmul %58, %20, %cst_24 {dimension_numbers = #tpu.dot_dimension_numbers<[1], [0], [0], [1], [0, 0, 1, 1], [], []>} : vector<2x32xf32>, vector<32x128xf32>, vector<2x128xf32> -> vector<2x128xf32>
    %61 = arith.addf %59, %60 : vector<2x128xf32>
    %62 = arith.negf %61 : vector<2x128xf32>
    %63 = math.exp %62 : vector<2x128xf32>
    %cst_25 = arith.constant 1.000000e+00 : f32
    %64 = vector.broadcast %cst_25 : f32 to vector<2x128xf32>
    %65 = arith.addf %64, %63 : vector<2x128xf32>
    %66 = arith.divf %64, %65 : vector<2x128xf32>
    %67 = math.tanh %61 : vector<2x128xf32>
    %68 = vector.extract_strided_slice %66 {offsets = [0, 32], sizes = [2, 32], strides = [1, 1]} : vector<2x128xf32> to vector<2x32xf32>
    %69 = arith.mulf %68, %55 : vector<2x32xf32>
    %70 = vector.extract_strided_slice %66 {offsets = [0, 0], sizes = [2, 32], strides = [1, 1]} : vector<2x128xf32> to vector<2x32xf32>
    %71 = vector.extract_strided_slice %67 {offsets = [0, 64], sizes = [2, 32], strides = [1, 1]} : vector<2x128xf32> to vector<2x32xf32>
    %72 = arith.mulf %70, %71 : vector<2x32xf32>
    %73 = arith.addf %69, %72 : vector<2x32xf32>
    %74 = vector.extract_strided_slice %66 {offsets = [0, 96], sizes = [2, 32], strides = [1, 1]} : vector<2x128xf32> to vector<2x32xf32>
    %75 = math.tanh %73 : vector<2x32xf32>
    %76 = arith.mulf %74, %75 : vector<2x32xf32>
    %77 = vector.extract_strided_slice %19 {offsets = [0, 384], sizes = [2, 128], strides = [1, 1]} : vector<2x512xf32> to vector<2x128xf32>
    %cst_26 = arith.constant dense<0.000000e+00> : vector<2x128xf32>
    %78 = tpu.matmul %76, %20, %cst_26 {dimension_numbers = #tpu.dot_dimension_numbers<[1], [0], [0], [1], [0, 0, 1, 1], [], []>} : vector<2x32xf32>, vector<32x128xf32>, vector<2x128xf32> -> vector<2x128xf32>
    %79 = arith.addf %77, %78 : vector<2x128xf32>
    %80 = arith.negf %79 : vector<2x128xf32>
    %81 = math.exp %80 : vector<2x128xf32>
    %cst_27 = arith.constant 1.000000e+00 : f32
    %82 = vector.broadcast %cst_27 : f32 to vector<2x128xf32>
    %83 = arith.addf %82, %81 : vector<2x128xf32>
    %84 = arith.divf %82, %83 : vector<2x128xf32>
    %85 = math.tanh %79 : vector<2x128xf32>
    %86 = vector.extract_strided_slice %84 {offsets = [0, 32], sizes = [2, 32], strides = [1, 1]} : vector<2x128xf32> to vector<2x32xf32>
    %87 = arith.mulf %86, %73 : vector<2x32xf32>
    %88 = vector.extract_strided_slice %84 {offsets = [0, 0], sizes = [2, 32], strides = [1, 1]} : vector<2x128xf32> to vector<2x32xf32>
    %89 = vector.extract_strided_slice %85 {offsets = [0, 64], sizes = [2, 32], strides = [1, 1]} : vector<2x128xf32> to vector<2x32xf32>
    %90 = arith.mulf %88, %89 : vector<2x32xf32>
    %91 = arith.addf %87, %90 : vector<2x32xf32>
    %92 = vector.extract_strided_slice %84 {offsets = [0, 96], sizes = [2, 32], strides = [1, 1]} : vector<2x128xf32> to vector<2x32xf32>
    %93 = math.tanh %91 : vector<2x32xf32>
    %94 = arith.mulf %92, %93 : vector<2x32xf32>
    %95 = tpu.concatenate %94, %91 in 1 : vector<2x32xf32>, vector<2x32xf32> -> vector<2x64xf32>
    %c0_28 = arith.constant 0 : index
    %c0_29 = arith.constant 0 : index
    %96 = vector.load %arg7[%c0_28, %c0_29] : memref<64x8xf32, #tpu.memory_space<vmem>>, vector<64x8xf32>
    %cst_30 = arith.constant dense<0.000000e+00> : vector<2x8xf32>
    %97 = tpu.matmul %95, %96, %cst_30 {dimension_numbers = #tpu.dot_dimension_numbers<[1], [0], [0], [1], [0, 0, 1, 1], [], []>} : vector<2x64xf32>, vector<64x8xf32>, vector<2x8xf32> -> vector<2x8xf32>
    %c0_31 = arith.constant 0 : index
    %c0_32 = arith.constant 0 : index
    %98 = vector.load %arg8[%c0_31, %c0_32] : memref<1x8xf32, #tpu.memory_space<vmem>>, vector<1x8xf32>
    %99 = vector.broadcast %98 : vector<1x8xf32> to vector<2x8xf32>
    %100 = arith.addf %97, %99 : vector<2x8xf32>
    %101 = math.tanh %100 : vector<2x8xf32>
    %c0_33 = arith.constant 0 : index
    %c0_34 = arith.constant 0 : index
    %102 = vector.load %arg9[%c0_33, %c0_34] : memref<8x32xf32, #tpu.memory_space<vmem>>, vector<8x32xf32>
    %cst_35 = arith.constant dense<0.000000e+00> : vector<2x32xf32>
    %103 = tpu.matmul %101, %102, %cst_35 {dimension_numbers = #tpu.dot_dimension_numbers<[1], [0], [0], [1], [0, 0, 1, 1], [], []>} : vector<2x8xf32>, vector<8x32xf32>, vector<2x32xf32> -> vector<2x32xf32>
    %104 = tpu.concatenate %101, %103 in 1 : vector<2x8xf32>, vector<2x32xf32> -> vector<2x40xf32>
    %c0_36 = arith.constant 0 : index
    %c0_37 = arith.constant 0 : index
    %105 = vector.load %arg10[%c0_36, %c0_37] : memref<2x40xf32, #tpu.memory_space<vmem>>, vector<2x40xf32>
    tpu.vector_store %arg10[%c0_36, %c0_37], %104 {strides = array<i32>} : memref<2x40xf32, #tpu.memory_space<vmem>>, vector<2x40xf32>,
    return
  }
  func.func @transform_0(%arg0: i32) -> (i32, i32) {
    %c0_i32 = arith.constant 0 : i32
    %c0_i32_0 = arith.constant 0 : i32
    %c0_i32_1 = arith.constant 0 : i32
    return %c0_i32, %c0_i32_0 : i32, i32
  }
  func.func @transform_1(%arg0: i32) -> (i32, i32) {
    %c0_i32 = arith.constant 0 : i32
    %c0_i32_0 = arith.constant 0 : i32
    %c0_i32_1 = arith.constant 0 : i32
    return %c0_i32, %c0_i32_0 : i32, i32
  }
  func.func @transform_2(%arg0: i32) -> (i32, i32) {
    %c0_i32 = arith.constant 0 : i32
    %c0_i32_0 = arith.constant 0 : i32
    %c0_i32_1 = arith.constant 0 : i32
    return %c0_i32, %c0_i32_0 : i32, i32
  }
  func.func @transform_3(%arg0: i32) -> (i32, i32) {
    %c0_i32 = arith.constant 0 : i32
    %c0_i32_0 = arith.constant 0 : i32
    %c0_i32_1 = arith.constant 0 : i32
    return %c0_i32, %c0_i32_0 : i32, i32
  }
  func.func @transform_4(%arg0: i32) -> (i32, i32) {
    %c0_i32 = arith.constant 0 : i32
    %c0_i32_0 = arith.constant 0 : i32
    %c0_i32_1 = arith.constant 0 : i32
    return %c0_i32, %c0_i32_0 : i32, i32
  }
  func.func @transform_5(%arg0: i32) -> (i32, i32) {
    %c0_i32 = arith.constant 0 : i32
    %c0_i32_0 = arith.constant 0 : i32
    %c0_i32_1 = arith.constant 0 : i32
    return %c0_i32, %c0_i32_0 : i32, i32
  }
  func.func @transform_6(%arg0: i32) -> (i32, i32) {
    %c0_i32 = arith.constant 0 : i32
    %c0_i32_0 = arith.constant 0 : i32
    %c0_i32_1 = arith.constant 0 : i32
    return %c0_i32, %c0_i32_0 : i32, i32
  }
  func.func @transform_7(%arg0: i32) -> (i32, i32) {
    %c0_i32 = arith.constant 0 : i32
    %c0_i32_0 = arith.constant 0 : i32
    %c0_i32_1 = arith.constant 0 : i32
    return %c0_i32, %c0_i32_0 : i32, i32
  }
  func.func @transform_8(%arg0: i32) -> (i32, i32) {
    %c0_i32 = arith.constant 0 : i32
    %c0_i32_0 = arith.constant 0 : i32
    %c0_i32_1 = arith.constant 0 : i32
    return %c0_i32, %c0_i32_0 : i32, i32
  }
  func.func @transform_9(%arg0: i32) -> (i32, i32) {
    %c0_i32 = arith.constant 0 : i32
    %c0_i32_0 = arith.constant 0 : i32
    %c0_i32_1 = arith.constant 0 : i32
    return %c0_i32, %c0_i32_0 : i32, i32
  }
}

</mosaic_0001>

<bundles_post_ra>
// kernel: mul.15
= control target key start
LH: loop header
LB: loop body
LE: loop exit
PB: predicated region body
PF: predicated region fallthrough
CT: control target
= control target key end

     0   :  { %s6_s8 = smov 3  ;;  %vm8_vm0 = vcmask 523264   ;;  %s24_s9 = smov 64   ;;  %vm15_vm1 = vcmask 1048064   ;;  %s41_s0 = inlined_call_operand.vmem [shape: f32[4,64], index: 0, kind: input, shape index: {}]   ;;  %s42_s1 = inlined_call_operand.vmem [shape: f32[256], index: 1, kind: output, shape index: {}]  }
   0x1   :  { %v4_v0 = vld [vmem:[%s41_s0] sm:$0xf]  ;;  %s11_s0 = smov 3 }
   0x2   :  { %5 = vst [vmem:[#allocation1] sm:$0xf] %v4_v0 }
   0x9   :  { %v12_v1 = vld [vmem:[#allocation1 + $0x1] ss:$2 sm:%s11_s0]   ;;  %v7_v2 = vld [vmem:[#allocation1] ss:$2 sm:%s6_s8]  }
   0xa   :  { %13 = vrot.lane.b32.xlu0 %v12_v1, %s24_s9  ;;  %9 = vst.msk [vmem:[#allocation0] sm:$0x3] %vm8_vm0, %v7_v2  }
  0x7c   :  { %v14_v3 = vpop.permute.xlu0 %13  }
  0x7d   :  { %16 = vst.msk [vmem:[#allocation0] sm:$0x3] %vm15_vm1, %v14_v3  }
  0x84   :  { %v20_v4 = vld [vmem:[#allocation0] sm:$0x3] }
  0x85   :  { %22 = vst [vmem:[%s42_s1] sm:$0x3] %v20_v4 }

// kernel: tile.14
= control target key start
LH: loop header
LB: loop body
LE: loop exit
PB: predicated region body
PF: predicated region fallthrough
CT: control target
= control target key end

     0   :  { %vm7_vm0 = vcmask 31744   ;;  %s37_s8 = smov 4   ;;  %s38_s9 = smov 8   ;;  %vm13_vm1 = vcmask 130144   ;;  %vm19_vm2 = vcmask 97344   ;;  %vm25_vm3 = vcmask 64544   ;;  %s55_s0 = inlined_call_operand.vmem [shape: f32[4,4], index: 0, kind: input, shape index: {}]   ;;  %s56_s1 = inlined_call_operand.vmem [shape: f32[16], index: 1, kind: output, shape index: {}]  }
   0x1   :  { %v4_v0 = vld [vmem:[%s55_s0] sm:$0xf]  ;;  %s36_s0 = smov 12  }
   0x2   :  { %5 = vst [vmem:[#allocation1] sm:$0xf] %v4_v0 }
   0x9   :  { %v10_v1 = vld [vmem:[#allocation1 + $0x3] sm:$0x1]   ;;  %v22_v2 = vld [vmem:[#allocation1 + $0x1] sm:$0x1]   ;;  %v6_v3 = vld [vmem:[#allocation1] sm:$0x1]  }
   0xa   :  { %11 = vrot.lane.b32.xlu0 %v10_v1, %s36_s0  ;;  %23 = vrot.lane.b32.xlu1 %v22_v2, %s37_s8  ;;  %v16_v4 = vld [vmem:[#allocation1 + $0x2] sm:$0x1]   ;;  %8 = vst.msk [vmem:[#allocation0] sm:$0x1] %vm7_vm0, %v6_v3  }
   0xe   :  { %17 = vrot.lane.b32.xlu0 %v16_v4, %s38_s9 }
  0x7c   :  { %v12_v5 = vpop.permute.xlu0 %11   ;;  %v24_v6 = vpop.permute.xlu1 %23  }
  0x7d   :  { %14 = vst.msk [vmem:[#allocation0] sm:$0x1] %vm13_vm1, %v12_v5  }
  0x80   :  { %v18_v7 = vpop.permute.xlu0 %17  }
  0x81   :  { %20 = vst.msk [vmem:[#allocation0] sm:$0x1] %vm19_vm2, %v18_v7  }
  0x82   :  { %26 = vst.msk [vmem:[#allocation0] sm:$0x1] %vm25_vm3, %v24_v6  }
  0x89   :  { %v30_v8 = vld [vmem:[#allocation0] sm:$0x1] }
  0x8a   :  { %32 = vst [vmem:[%s56_s1] sm:$0x1] %v30_v8 }

// kernel: tile.15
= control target key start
LH: loop header
LB: loop body
LE: loop exit
PB: predicated region body
PF: predicated region fallthrough
CT: control target
= control target key end

     0   :  { %s22_s0 = inlined_call_operand.vmem [shape: f32[16], index: 0, kind: input, shape index: {}]   ;;  %s23_s1 = inlined_call_operand.vmem [shape: f32[4,16], index: 1, kind: output, shape index: {}]  }
   0x1   :  { %v4_v0 = vld [vmem:[%s22_s0] ss:$0 sm:$0xff] }
   0x2   :  { %5 = vst [vmem:[%s23_s1] sm:$0xf] %v4_v0 }

// kernel: mul.21
= control target key start
LH: loop header
LB: loop body
LE: loop exit
PB: predicated region body
PF: predicated region fallthrough
CT: control target
= control target key end

     0   :  { %vm7_vm0 = vcmask 130048   ;;  %s37_s8 = smov 16   ;;  %s38_s9 = smov 32   ;;  %vm13_vm1 = vcmask 523648   ;;  %vm19_vm2 = vcmask 392448   ;;  %vm25_vm3 = vcmask 261248   ;;  %s55_s0 = inlined_call_operand.vmem [shape: f32[4,16], index: 0, kind: input, shape index: {}]   ;;  %s56_s1 = inlined_call_operand.vmem [shape: f32[64], index: 1, kind: output, shape index: {}]  }
   0x1   :  { %v4_v0 = vld [vmem:[%s55_s0] sm:$0xf]  ;;  %s36_s0 = smov 48  }
   0x2   :  { %5 = vst [vmem:[#allocation1] sm:$0xf] %v4_v0 }
   0x9   :  { %v10_v1 = vld [vmem:[#allocation1 + $0x3] sm:$0x1]   ;;  %v22_v2 = vld [vmem:[#allocation1 + $0x1] sm:$0x1]   ;;  %v6_v3 = vld [vmem:[#allocation1] sm:$0x1]  }
   0xa   :  { %11 = vrot.lane.b32.xlu0 %v10_v1, %s36_s0  ;;  %23 = vrot.lane.b32.xlu1 %v22_v2, %s37_s8  ;;  %v16_v4 = vld [vmem:[#allocation1 + $0x2] sm:$0x1]   ;;  %8 = vst.msk [vmem:[#allocation0] sm:$0x1] %vm7_vm0, %v6_v3  }
   0xe   :  { %17 = vrot.lane.b32.xlu0 %v16_v4, %s38_s9 }
  0x7c   :  { %v12_v5 = vpop.permute.xlu0 %11   ;;  %v24_v6 = vpop.permute.xlu1 %23  }
  0x7d   :  { %14 = vst.msk [vmem:[#allocation0] sm:$0x1] %vm13_vm1, %v12_v5  }
  0x80   :  { %v18_v7 = vpop.permute.xlu0 %17  }
  0x81   :  { %20 = vst.msk [vmem:[#allocation0] sm:$0x1] %vm19_vm2, %v18_v7  }
  0x82   :  { %26 = vst.msk [vmem:[#allocation0] sm:$0x1] %vm25_vm3, %v24_v6  }
  0x89   :  { %v30_v8 = vld [vmem:[#allocation0] sm:$0x1] }
  0x8a   :  { %32 = vst [vmem:[%s56_s1] sm:$0x1] %v30_v8 }

// kernel: tile.20
= control target key start
LH: loop header
LB: loop body
LE: loop exit
PB: predicated region body
PF: predicated region fallthrough
CT: control target
= control target key end

     0   :  { %vm7_vm0 = vcmask 130048   ;;  %s37_s8 = smov 16   ;;  %s38_s9 = smov 32   ;;  %vm13_vm1 = vcmask 523648   ;;  %vm19_vm2 = vcmask 392448   ;;  %vm25_vm3 = vcmask 261248   ;;  %s55_s0 = inlined_call_operand.vmem [shape: f32[4,16], index: 0, kind: input, shape index: {}]   ;;  %s56_s1 = inlined_call_operand.vmem [shape: f32[1,64], index: 1, kind: output, shape index: {}]  }
   0x1   :  { %v4_v0 = vld [vmem:[%s55_s0] sm:$0xf]  ;;  %s36_s0 = smov 48  }
   0x2   :  { %5 = vst [vmem:[#allocation1] sm:$0xf] %v4_v0 }
   0x9   :  { %v10_v1 = vld [vmem:[#allocation1 + $0x3] sm:$0x1]   ;;  %v22_v2 = vld [vmem:[#allocation1 + $0x1] sm:$0x1]   ;;  %v6_v3 = vld [vmem:[#allocation1] sm:$0x1]  }
   0xa   :  { %11 = vrot.lane.b32.xlu0 %v10_v1, %s36_s0  ;;  %23 = vrot.lane.b32.xlu1 %v22_v2, %s37_s8  ;;  %v16_v4 = vld [vmem:[#allocation1 + $0x2] sm:$0x1]   ;;  %8 = vst.msk [vmem:[#allocation0] sm:$0x1] %vm7_vm0, %v6_v3  }
   0xe   :  { %17 = vrot.lane.b32.xlu0 %v16_v4, %s38_s9 }
  0x7c   :  { %v12_v5 = vpop.permute.xlu0 %11   ;;  %v24_v6 = vpop.permute.xlu1 %23  }
  0x7d   :  { %14 = vst.msk [vmem:[#allocation0] sm:$0x1] %vm13_vm1, %v12_v5  }
  0x80   :  { %v18_v7 = vpop.permute.xlu0 %17  }
  0x81   :  { %20 = vst.msk [vmem:[#allocation0] sm:$0x1] %vm19_vm2, %v18_v7  }
  0x82   :  { %26 = vst.msk [vmem:[#allocation0] sm:$0x1] %vm25_vm3, %v24_v6  }
  0x89   :  { %v30_v8 = vld [vmem:[#allocation0] sm:$0x1] }
  0x8a   :  { %32 = vst [vmem:[%s56_s1] sm:$0x1] %v30_v8 }

// kernel: _lambda_.1
= control target key start
LH: loop header
LB: loop body
LE: loop exit
PB: predicated region body
PF: predicated region fallthrough
CT: control target
= control target key end

     0   :  { %vm1440_vm0 = vmmov 0   ;;  %vm357_vm1 = vcmask 523264   ;;  %vm507_vm2 = vcmask 261120   ;;  %vm1001_vm3 = vcmask 64512   ;;  %s1443_s30 = smov 8   ;;  %s2029_s1 = inlined_call_operand.vmem [shape: f32[256,320], index: 1, kind: input, shape index: {}]   ;;  %s2030_s0 = inlined_call_operand.vmem [shape: f32[2,256], index: 0, kind: input, shape index: {}]   ;;  %s2031_s3 = inlined_call_operand.vmem [shape: f32[64,512], index: 3, kind: input, shape index: {}]   ;;  %s2032_s2 = inlined_call_operand.vmem [shape: f32[1,320], index: 2, kind: input, shape index: {}]   ;;  %s2033_s5 = inlined_call_operand.vmem [shape: f32[32,128], index: 5, kind: input, shape index: {}]   ;;  %s2034_s4 = inlined_call_operand.vmem [shape: f32[1,512], index: 4, kind: input, shape index: {}]   ;;  %s2035_s6 = inlined_call_operand.vmem [shape: f32[64,8], index: 6, kind: input, shape index: {}]   ;;  %s2036_s8 = inlined_call_operand.vmem [shape: f32[8,32], index: 8, kind: input, shape index: {}]   ;;  %s2037_s7 = inlined_call_operand.vmem [shape: f32[1,8], index: 7, kind: input, shape index: {}]   ;;  %s2038_s9 = inlined_call_operand.vmem [shape: f32[2,40], index: 9, kind: output, shape index: {}]  }
   0x1   :  { %v34_v0 = vld [vmem:[%s2029_s1 + $0x8] sm:$0xff]  ;;  %v36_v1 = vld [vmem:[%s2029_s1 + $0x20] sm:$0xff]  ;;  %v35_v4 = vld [vmem:[%s2029_s1 + $0x18] sm:$0xff]  ;;  %vm1080_vm4 = vcmask 320512  }
   0x2   :  { %v33_v2 = vld [vmem:[%s2029_s1] sm:$0xff]  ;;  %v1234_v3 = vpack.c.bf16 %v36_v1, %v34_v0  ;;  %v38_v5 = vld [vmem:[%s2029_s1 + $0x38] sm:$0xff]  ;;  %v40_v6 = vld [vmem:[%s2029_s1 + $0x50] sm:$0xff] }
   0x3   :  { %v1236_v7 = vpack.c.bf16 %v35_v4, %v33_v2  ;;  %v1238_v8 = vpack.c.bf16 %v40_v6, %v38_v5  ;;  %v37_v9 = vld [vmem:[%s2029_s1 + $0x30] sm:$0xff]  ;;  %v39_v10 = vld [vmem:[%s2029_s1 + $0x48] sm:$0xff]  ;;  %v44_v12 = vld [vmem:[%s2029_s1 + $0x80] sm:$0xff] }
   0x4   :  { %v42_v11 = vld [vmem:[%s2029_s1 + $0x68] sm:$0xff]  ;;  %1235 = vmatprep.subr.bf16.mxu0 %v1234_v3  ;;  %v1240_v13 = vpack.c.bf16 %v39_v10, %v37_v9  ;;  %v41_v15 = vld [vmem:[%s2029_s1 + $0x60] sm:$0xff]  ;;  %v43_v16 = vld [vmem:[%s2029_s1 + $0x78] sm:$0xff] }
   0x5   :  { %1237 = vmatpush1.bf16.msra.mxu0 %v1236_v7  ;;  %v1242_v14 = vpack.c.bf16 %v44_v12, %v42_v11  ;;  %v46_v17 = vld [vmem:[%s2029_s1 + $0x98] sm:$0xff]  ;;  %v48_v18 = vld [vmem:[%s2029_s1 + $0xb0] sm:$0xff]  ;;  %v1244_v19 = vpack.c.bf16 %v43_v16, %v41_v15  ;;  %v47_v22 = vld [vmem:[%s2029_s1 + $0xa8] sm:$0xff] }
   0x6   :  { %1239 = vmatprep.subr.bf16.mxu0 %v1238_v8  ;;  %v1246_v20 = vpack.c.bf16 %v48_v18, %v46_v17  ;;  %v45_v21 = vld [vmem:[%s2029_s1 + $0x90] sm:$0xff]  ;;  %v50_v23 = vld [vmem:[%s2029_s1 + $0xc8] sm:$0xff]  ;;  %v52_v24 = vld [vmem:[%s2029_s1 + $0xe0] sm:$0xff] }
   0x7   :  { %v1248_v25 = vpack.c.bf16 %v47_v22, %v45_v21  ;;  %v1250_v26 = vpack.c.bf16 %v52_v24, %v50_v23  ;;  %v49_v27 = vld [vmem:[%s2029_s1 + $0xc0] sm:$0xff]  ;;  %v51_v28 = vld [vmem:[%s2029_s1 + $0xd8] sm:$0xff]  ;;  %v56_v30 = vld [vmem:[%s2029_s1 + $0x110] sm:$0xff] }
   0x8   :  { %v54_v29 = vld [vmem:[%s2029_s1 + $0xf8] sm:$0xff]  ;;  %v1252_v31 = vpack.c.bf16 %v51_v28, %v49_v27  ;;  %v53_v33 = vld [vmem:[%s2029_s1 + $0xf0] sm:$0xff]  ;;  %v55_v34 = vld [vmem:[%s2029_s1 + $0x108] sm:$0xff] }
   0x9   :  { %1241 = vmatpush1.bf16.msra.mxu0 %v1240_v13  ;;  %v1254_v32 = vpack.c.bf16 %v56_v30, %v54_v29  ;;  %v58_v35 = vld [vmem:[%s2029_s1 + $0x128] sm:$0xff]  ;;  %v60_v36 = vld [vmem:[%s2029_s1 + $0x140] sm:$0xff]  ;;  %v1256_v37 = vpack.c.bf16 %v55_v34, %v53_v33  ;;  %v59_v39 = vld [vmem:[%s2029_s1 + $0x138] sm:$0xff] }
   0xa   :  { %1243 = vmatprep.subr.bf16.mxu0 %v1242_v14  ;;  %v57_v38 = vld [vmem:[%s2029_s1 + $0x120] sm:$0xff]  ;;  %v62_v40 = vld [vmem:[%s2029_s1 + $0x158] sm:$0xff]  ;;  %v1258_v41 = vpack.c.bf16 %v60_v36, %v58_v35  ;;  %v64_v42 = vld [vmem:[%s2029_s1 + $0x170] sm:$0xff] }
   0xb   :  { %v1587_v43 = vld.sshfl [vmem:[%s2030_s0] sm:$0x33 pattern:$0x76325410]  ;;  %v209_v44 = vld [vmem:[%s2029_s1 + $0x190] sm:$0xff]  ;;  %v210_v46 = vld [vmem:[%s2029_s1 + $0x1a8] sm:$0xff]  ;;  %v1260_v54 = vpack.c.bf16 %v59_v39, %v57_v38  ;;  %v1262_v59 = vpack.c.bf16 %v64_v42, %v62_v40 }
   0xc   :  { %v117_v45 = vcombine.high %v1587_v43, %v1587_v43  ;;  %v193_v47 = vld [vmem:[%s2029_s1 + $0x10] sm:$0xff]  ;;  %v194_v48 = vld [vmem:[%s2029_s1 + $0x28] sm:$0xff]  ;;  %v1298_v49 = vpack.c.bf16 %v210_v46, %v209_v44  ;;  %v211_v51 = vld [vmem:[%s2029_s1 + $0x1c0] sm:$0xff] }
   0xd   :  { %1245 = vmatpush1.bf16.msra.mxu0 %v1244_v19  ;;  %v1300_v50 = vpack.c.bf16 %v194_v48, %v193_v47  ;;  %v212_v52 = vld [vmem:[%s2029_s1 + $0x1d8] sm:$0xff]  ;;  %v195_v53 = vld [vmem:[%s2029_s1 + $0x40] sm:$0xff]  ;;  %v213_v57 = vld [vmem:[%s2029_s1 + $0x1f0] sm:$0xff] }
   0xe   :  { %1247 = vmatprep.subr.bf16.mxu0 %v1246_v20  ;;  %184 = vmatprep.mubr.f32.mxu0 %v117_v45  ;;  %v1302_v55 = vpack.c.bf16 %v212_v52, %v211_v51  ;;  %v196_v56 = vld [vmem:[%s2029_s1 + $0x58] sm:$0xff]  ;;  %v214_v58 = vld [vmem:[%s2029_s1 + $0x208] sm:$0xff]  ;;  %v61_v60 = vld [vmem:[%s2029_s1 + $0x150] sm:$0xff] }
   0xf   :  { %v63_v61 = vld [vmem:[%s2029_s1 + $0x168] sm:$0xff]  ;;  %1299 = vmatprep.subr.bf16.mxu1 %v1298_v49  ;;  %v68_v63 = vld [vmem:[%s2029_s1 + $0x1a0] sm:$0xff]  ;;  %v1304_v0 = vpack.c.bf16 %v196_v56, %v195_v53  ;;  %v1306_v1 = vpack.c.bf16 %v214_v58, %v213_v57  ;;  %v197_v2 = vld [vmem:[%s2029_s1 + $0x70] sm:$0xff] }
  0x10   :  { %v66_v62 = vld [vmem:[%s2029_s1 + $0x188] sm:$0xff]  ;;  %1301 = vmatpush3.bf16.msra.mxu1 %v1300_v50  ;;  %v1264_v4 = vpack.c.bf16 %v63_v61, %v61_v60  ;;  %v215_v5 = vld [vmem:[%s2029_s1 + $0x220] sm:$0xff]  ;;  %v216_v6 = vld [vmem:[%s2029_s1 + $0x238] sm:$0xff] }
  0x11   :  { %1249 = vmatpush1.bf16.msra.mxu0 %v1248_v25  ;;  %1303 = vmatprep.subr.bf16.mxu1 %v1302_v55  ;;  %v198_v3 = vld [vmem:[%s2029_s1 + $0x88] sm:$0xff]  ;;  %v1266_v7 = vpack.c.bf16 %v68_v63, %v66_v62  ;;  %v65_v8 = vld [vmem:[%s2029_s1 + $0x180] sm:$0xff]  ;;  %v67_v9 = vld [vmem:[%s2029_s1 + $0x198] sm:$0xff]  ;;  %v1310_v13 = vpack.c.bf16 %v216_v6, %v215_v5 }
  0x12   :  { %1251 = vmatprep.subr.bf16.mxu0 %v1250_v26  ;;  %v70_v10 = vld [vmem:[%s2029_s1 + $0x1b8] sm:$0xff]  ;;  %v72_v11 = vld [vmem:[%s2029_s1 + $0x1d0] sm:$0xff]  ;;  %v1308_v12 = vpack.c.bf16 %v198_v3, %v197_v2  ;;  %v199_v14 = vld [vmem:[%s2029_s1 + $0xa0] sm:$0xff]  ;;  %v1268_v16 = vpack.c.bf16 %v67_v9, %v65_v8 }
  0x13   :  { %v200_v15 = vld [vmem:[%s2029_s1 + $0xb8] sm:$0xff]  ;;  %v217_v17 = vld [vmem:[%s2029_s1 + $0x250] sm:$0xff]  ;;  %v218_v18 = vld [vmem:[%s2029_s1 + $0x268] sm:$0xff]  ;;  %v1270_v19 = vpack.c.bf16 %v72_v11, %v70_v10 }
  0x14   :  { %1305 = vmatpush3.bf16.msra.mxu1 %v1304_v0  ;;  %v69_v20 = vld [vmem:[%s2029_s1 + $0x1b0] sm:$0xff]  ;;  %v71_v21 = vld [vmem:[%s2029_s1 + $0x1c8] sm:$0xff]  ;;  %v76_v23 = vld [vmem:[%s2029_s1 + $0x200] sm:$0xff]  ;;  %v1312_v24 = vpack.c.bf16 %v200_v15, %v199_v14  ;;  %v1314_v25 = vpack.c.bf16 %v218_v18, %v217_v17 }
  0x15   :  { %1253 = vmatpush1.bf16.msra.mxu0 %v1252_v31  ;;  %1307 = vmatprep.subr.bf16.mxu1 %v1306_v1  ;;  %v74_v22 = vld [vmem:[%s2029_s1 + $0x1e8] sm:$0xff]  ;;  %v201_v26 = vld [vmem:[%s2029_s1 + $0xd0] sm:$0xff]  ;;  %v1272_v28 = vpack.c.bf16 %v71_v21, %v69_v20  ;;  %v219_v29 = vld [vmem:[%s2029_s1 + $0x280] sm:$0xff]  ;;  %v99_v21 = vlaneseq }
  0x16   :  { %1255 = vmatprep.subr.bf16.mxu0 %v1254_v32  ;;  %v202_v27 = vld [vmem:[%s2029_s1 + $0xe8] sm:$0xff]  ;;  %v220_v30 = vld [vmem:[%s2029_s1 + $0x298] sm:$0xff]  ;;  %v1274_v31 = vpack.c.bf16 %v76_v23, %v74_v22  ;;  %v73_v32 = vld [vmem:[%s2029_s1 + $0x1e0] sm:$0xff] }
  0x17   :  { %v75_v33 = vld [vmem:[%s2029_s1 + $0x1f8] sm:$0xff]  ;;  %v80_v35 = vld [vmem:[%s2029_s1 + $0x230] sm:$0xff]  ;;  %v1316_v36 = vpack.c.bf16 %v202_v27, %v201_v26  ;;  %v203_v38 = vld [vmem:[%s2029_s1 + $0x100] sm:$0xff]  ;;  %v1796_v22 = vshrl.u32 %v99_v21, 7 }
  0x18   :  { %1309 = vmatpush3.bf16.msra.mxu1 %v1308_v12  ;;  %v78_v34 = vld [vmem:[%s2029_s1 + $0x218] sm:$0xff]  ;;  %v1276_v40 = vpack.c.bf16 %v75_v33, %v73_v32  ;;  %v222_v42 = vld [vmem:[%s2029_s1 + $0x2c8] sm:$0xff]  ;;  %v77_v45 = vld [vmem:[%s2029_s1 + $0x210] sm:$0xff] }
  0x19   :  { %1257 = vmatpush1.bf16.msra.mxu0 %v1256_v37  ;;  %1311 = vmatprep.subr.bf16.mxu1 %v1310_v13  ;;  %v1318_v37 = vpack.c.bf16 %v220_v30, %v219_v29  ;;  %v204_v39 = vld [vmem:[%s2029_s1 + $0x118] sm:$0xff]  ;;  %v1278_v44 = vpack.c.bf16 %v80_v35, %v78_v34  ;;  %v79_v46 = vld [vmem:[%s2029_s1 + $0x228] sm:$0xff]  ;;  %v84_v48 = vld [vmem:[%s2029_s1 + $0x260] sm:$0xff]  ;;  %v101_v23 = vsub.s32 0, %v1796_v22 }
  0x1a   :  { %1259 = vmatprep.subr.bf16.mxu0 %v1258_v41  ;;  %v221_v41 = vld [vmem:[%s2029_s1 + $0x2b0] sm:$0xff]  ;;  %v82_v47 = vld [vmem:[%s2029_s1 + $0x248] sm:$0xff]  ;;  %v1320_v49 = vpack.c.bf16 %v204_v39, %v203_v38  ;;  %v1280_v51 = vpack.c.bf16 %v79_v46, %v77_v45  ;;  %v81_v53 = vld [vmem:[%s2029_s1 + $0x240] sm:$0xff] }
  0x1b   :  { %v1322_v50 = vpack.c.bf16 %v222_v42, %v221_v41  ;;  %v1282_v52 = vpack.c.bf16 %v84_v48, %v82_v47  ;;  %v86_v55 = vld [vmem:[%s2029_s1 + $0x278] sm:$0xff]  ;;  %v88_v56 = vld [vmem:[%s2029_s1 + $0x290] sm:$0xff]  ;;  %v87_v60 = vld [vmem:[%s2029_s1 + $0x288] sm:$0xff] }
  0x1c   :  { %1313 = vmatpush3.bf16.msra.mxu1 %v1312_v24  ;;  %v1286_v58 = vpack.c.bf16 %v88_v56, %v86_v55  ;;  %v90_v61 = vld [vmem:[%s2029_s1 + $0x2a8] sm:$0xff]  ;;  %v92_v62 = vld [vmem:[%s2029_s1 + $0x2c0] sm:$0xff]  ;;  %v91_v2 = vld [vmem:[%s2029_s1 + $0x2b8] sm:$0xff] }
  0x1d   :  { %1261 = vmatpush1.bf16.msra.mxu0 %v1260_v54  ;;  %1315 = vmatprep.subr.bf16.mxu1 %v1314_v25  ;;  %v83_v54 = vld [vmem:[%s2029_s1 + $0x258] sm:$0xff]  ;;  %v1290_v0 = vpack.c.bf16 %v92_v62, %v90_v61  ;;  %v89_v1 = vld [vmem:[%s2029_s1 + $0x2a0] sm:$0xff]  ;;  %v95_v8 = vld [vmem:[%s2029_s1 + $0x2e8] sm:$0xff]  ;;  %v105_v25 = vsub.s32 1, %v1796_v22 }
  0x1e   :  { %1263 = vmatprep.subr.bf16.mxu0 %v1262_v59  ;;  %v1284_v57 = vpack.c.bf16 %v83_v54, %v81_v53  ;;  %v85_v59 = vld [vmem:[%s2029_s1 + $0x270] sm:$0xff]  ;;  %v94_v3 = vld [vmem:[%s2029_s1 + $0x2d8] sm:$0xff]  ;;  %v1292_v5 = vpack.c.bf16 %v91_v2, %v89_v1  ;;  %v206_v11 = vld [vmem:[%s2029_s1 + $0x148] sm:$0xff] }
  0x1f   :  { %v1288_v63 = vpack.c.bf16 %v87_v60, %v85_v59  ;;  %v205_v10 = vld [vmem:[%s2029_s1 + $0x130] sm:$0xff]  ;;  %v223_v13 = vld [vmem:[%s2029_s1 + $0x2e0] sm:$0xff]  ;;  %v224_v14 = vld [vmem:[%s2029_s1 + $0x2f8] sm:$0xff]  ;;  %v1438_v59 = vmov 0.0  }
  0x20   :  { %1317 = vmatpush3.bf16.msra.mxu1 %v1316_v36  ;;  %v1324_v12 = vpack.c.bf16 %v206_v11, %v205_v10  ;;  %v1326_v15 = vpack.c.bf16 %v224_v14, %v223_v13  ;;  %v304_v18 = vld [vmem:[%s2031_s3 + $0x8] sm:$0xff]  ;;  %v97_v24 = vld [vmem:[%s2032_s2] sm:$0x3]  ;;  %v306_v56 = vld [vmem:[%s2031_s3 + $0x18] sm:$0xff] }
  0x21   :  { %1265 = vmatpush1.bf16.msra.mxu0 %v1264_v4  ;;  %1319 = vmatprep.subr.bf16.mxu1 %v1318_v37  ;;  %v96_v4 = vld [vmem:[%s2029_s1 + $0x2f0] sm:$0xff]  ;;  %v102_v26 = vrot.slane %v97_v24, %v101_v23  ;;  %v106_v27 = vrot.slane %v97_v24, %v105_v25  ;;  %v307_v32 = vld [vmem:[%s2031_s3 + $0x20] sm:$0xff]  ;;  %v312_v34 = vld [vmem:[%s2031_s3 + $0x48] sm:$0xff] }
  0x22   :  { %1267 = vmatprep.subr.bf16.mxu0 %v1266_v7  ;;  %v1294_v6 = vpack.c.bf16 %v96_v4, %v94_v3  ;;  %v93_v7 = vld [vmem:[%s2029_s1 + $0x2d0] sm:$0xff]  ;;  %v316_v35 = vld [vmem:[%s2031_s3 + $0x68] sm:$0xff]  ;;  %v315_v41 = vld [vmem:[%s2031_s3 + $0x60] sm:$0xff] }
  0x23   :  { %v1296_v9 = vpack.c.bf16 %v95_v8, %v93_v7  ;;  %v1334_v39 = vpack.c.bf16 %v316_v35, %v312_v34  ;;  %v320_v42 = vld [vmem:[%s2031_s3 + $0x88] sm:$0xff]  ;;  %v319_v47 = vld [vmem:[%s2031_s3 + $0x80] sm:$0xff]  ;;  %v506_v1 = vld [vmem:[%s2033_s5 + $0x18] sm:$0xff] }
  0x24   :  { %1321 = vmatpush3.bf16.msra.mxu1 %v1320_v49  ;;  %v323_v48 = vld [vmem:[%s2031_s3 + $0xa0] sm:$0xff]  ;;  %v504_v61 = vld [vmem:[%s2033_s5 + $0x8] sm:$0xff]  ;;  %v305_v7 = vld [vmem:[%s2031_s3 + $0x10] sm:$0xff] }
  0x25   :  { %1269 = vmatpush1.bf16.msra.mxu0 %v1268_v16  ;;  %1323 = vmatprep.subr.bf16.mxu1 %v1322_v50  ;;  %v208_v16 = vld [vmem:[%s2029_s1 + $0x178] sm:$0xff]  ;;  %v1340_v49 = vpack.c.bf16 %v323_v48, %v319_v47  ;;  %v328_v50 = vld [vmem:[%s2031_s3 + $0xc8] sm:$0xff]  ;;  %v327_v53 = vld [vmem:[%s2031_s3 + $0xc0] sm:$0xff] }
  0x26   :  { %1271 = vmatprep.subr.bf16.mxu0 %v1270_v19  ;;  %v308_v19 = vld [vmem:[%s2031_s3 + $0x28] sm:$0xff]  ;;  %v331_v54 = vld [vmem:[%s2031_s3 + $0xe0] sm:$0xff]  ;;  %v309_v8 = vld [vmem:[%s2031_s3 + $0x30] sm:$0xff] }
  0x27   :  { %v1330_v20 = vpack.c.bf16 %v308_v19, %v304_v18  ;;  %v1344_v55 = vpack.c.bf16 %v331_v54, %v327_v53  ;;  %v503_v60 = vld [vmem:[%s2033_s5] sm:$0xff]  ;;  %v318_v10 = vld [vmem:[%s2031_s3 + $0x78] sm:$0xff]  ;;  %v325_v21 = vld [vmem:[%s2031_s3 + $0xb0] sm:$0xff] }
  0x28   :  { %1325 = vmatpush3.bf16.msra.mxu1 %v1324_v12  ;;  %v1862_v62 = vpack.c.bf16 %v504_v61, %v503_v60  ;;  %v1087_v4 = vld [vmem:[%s2032_s2 + $0x2] ss:$0 sm:$0xff]  ;;  %v1348_v12 = vpack.c.bf16 %v309_v8, %v305_v7  ;;  %v330_v24 = vld [vmem:[%s2031_s3 + $0xd8] sm:$0xff] }
  0x29   :  { %1273 = vmatpush1.bf16.msra.mxu0 %v1272_v28  ;;  %1327 = vmatprep.subr.bf16.mxu1 %v1326_v15  ;;  %v313_v15 = vld [vmem:[%s2031_s3 + $0x50] sm:$0xff]  ;;  %v1944_v34 = vld [vmem:[%s2034_s4] sm:$0xf]  ;;  %s1442_s4 = smov 32  }
  0x2a   :  { %1275 = vmatprep.subr.bf16.mxu0 %v1274_v31  ;;  %v303_v31 = vld [vmem:[%s2031_s3] sm:$0xff] }
  0x2b   :  { %v1332_v37 = vpack.c.bf16 %v307_v32, %v303_v31 }
  0x2d   :  { %1277 = vmatpush1.bf16.msra.mxu0 %v1276_v40  ;;  %v311_v40 = vld [vmem:[%s2031_s3 + $0x40] sm:$0xff] }
  0x2e   :  { %1279 = vmatprep.subr.bf16.mxu0 %v1278_v44  ;;  %v324_v44 = vld [vmem:[%s2031_s3 + $0xa8] sm:$0xff]  ;;  %v1336_v45 = vpack.c.bf16 %v315_v41, %v311_v40 }
  0x2f   :  { %v1338_v46 = vpack.c.bf16 %v324_v44, %v320_v42 }
  0x31   :  { %1281 = vmatpush1.bf16.msra.mxu0 %v1280_v51  ;;  %v332_v51 = vld [vmem:[%s2031_s3 + $0xe8] sm:$0xff] }
  0x32   :  { %1283 = vmatprep.subr.bf16.mxu0 %v1282_v52  ;;  %v1342_v52 = vpack.c.bf16 %v332_v51, %v328_v50 }
  0x35   :  { %1285 = vmatpush1.bf16.msra.mxu0 %v1284_v57  ;;  %v310_v57 = vld [vmem:[%s2031_s3 + $0x38] sm:$0xff] }
  0x36   :  { %1287 = vmatprep.subr.bf16.mxu0 %v1286_v58  ;;  %v1346_v58 = vpack.c.bf16 %v310_v57, %v306_v56  ;;  %v344_v56 = vrot.slane %v1944_v34, %v105_v25 }
  0x39   :  { %1289 = vmatpush1.bf16.msra.mxu0 %v1288_v63  ;;  %v1439_v63 = vmov 0.0|0.0  }
  0x3a   :  { %1291 = vmatprep.subr.bf16.mxu0 %v1290_v0  ;;  %v505_v0 = vld [vmem:[%s2033_s5 + $0x10] sm:$0xff] }
  0x3b   :  { %v1873_v2 = vpack.c.bf16 %v506_v1, %v505_v0 }
  0x3d   :  { %1293 = vmatpush1.bf16.msra.mxu0 %v1292_v5 }
  0x3e   :  { %1295 = vmatprep.subr.bf16.mxu0 %v1294_v6 }
  0x41   :  { %1297 = vmatpush1.bf16.msra.mxu0 %v1296_v9  ;;  %v314_v9 = vld [vmem:[%s2031_s3 + $0x58] sm:$0xff] }
  0x42   :  { %1374 = vmatprep.subr.bf16.mxu0 %v1439_v63  ;;  %v1350_v14 = vpack.c.bf16 %v318_v10, %v314_v9 }
  0x44   :  { %185 = vmatmul.mubr.f32.vlgmr.msra.gmra.mrb[0].mxu0 %v1587_v43  ;;  %v207_v43 = vld [vmem:[%s2029_s1 + $0x160] sm:$0xff]  ;;  %s1441_s1 = smov 64  }
  0x45   :  { %v1328_v17 = vpack.c.bf16 %v208_v16, %v207_v43  ;;  %1376 = vmatpush3.bf16.msra.mxu0 %v1862_v62  ;;  %1196 = vmatprep.mubr.msk.f32.mxu0 %vm1440_vm0, %v1438_v59  ;;  %v317_v43 = vld [vmem:[%s2031_s3 + $0x70] sm:$0xff]  ;;  %v322_v16 = vld [vmem:[%s2031_s3 + $0x98] sm:$0xff] }
  0x46   :  { %1377 = vmatprep.subr.bf16.mxu0 %v1439_v63  ;;  %v1352_v18 = vpack.c.bf16 %v317_v43, %v313_v15 }
  0x47   :  { %1329 = vmatpush3.bf16.msra.mxu1 %v1328_v17  ;;  %v326_v17 = vld [vmem:[%s2031_s3 + $0xb8] sm:$0xff] }
  0x48   :  { %1331 = vmatprep.subr.bf16.mxu1 %v1330_v20  ;;  %v1354_v19 = vpack.c.bf16 %v326_v17, %v322_v16  ;;  %v321_v20 = vld [vmem:[%s2031_s3 + $0x90] sm:$0xff] }
  0x49   :  { %1379 = vmatpush3.bf16.msra.mxu0 %v1873_v2 }
  0x4a   :  { %1386 = vmatprep.subr.bf16.mxu0 %v1439_v63 }
 0x117   :  { %v186_v28 = vpop.f32.mrb[0].mxu0 }
 0x118   :  { %v187_v29 = vadd.f32 %v186_v28, %v102_v26  ;;  %v188_v30 = vpop.f32.mrb[1].mxu0  ;;  %v334_v26 = vld [vmem:[%s2031_s3 + $0xf8] sm:$0xff] }
 0x119   :  { %v189_v33 = vadd.f32 %v188_v30, %v106_v27  ;;  %v1356_v27 = vpack.c.bf16 %v325_v21, %v321_v20  ;;  %v1358_v28 = vpack.c.bf16 %v334_v26, %v330_v24  ;;  %v333_v30 = vld [vmem:[%s2031_s3 + $0xf0] sm:$0xff] }
 0x11a   :  { %v191_v38 = vmax.f32 %v187_v29, 0.0  ;;  %v329_v29 = vld [vmem:[%s2031_s3 + $0xd0] sm:$0xff] }
 0x11b   :  { %v192_v36 = vmax.f32 %v189_v33, 0.0  ;;  %v1360_v31 = vpack.c.bf16 %v333_v30, %v329_v29 }
 0x11d   :  { %296 = vmatprep.mubr.f32.mxu1 %v192_v36 }
 0x11e   :  { %297 = vmatmul.mubr.f32.vlgmr.msra.gmra.mrb[0].mxu1 %v191_v38 }
 0x11f   :  { %1333 = vmatpush1.bf16.msra.mxu1 %v1332_v37  ;;  %425 = vmatprep.mubr.f32.mxu1 %v1438_v59  ;;  %v340_v37 = vrot.slane %v1944_v34, %v101_v23 }
 0x120   :  { %1335 = vmatprep.subr.bf16.mxu1 %v1334_v39 }
 0x123   :  { %1337 = vmatpush1.bf16.msra.mxu1 %v1336_v45 }
 0x124   :  { %1339 = vmatprep.subr.bf16.mxu1 %v1338_v46 }
 0x127   :  { %1341 = vmatpush1.bf16.msra.mxu1 %v1340_v49 }
 0x128   :  { %1343 = vmatprep.subr.bf16.mxu1 %v1342_v52 }
 0x12b   :  { %1345 = vmatpush1.bf16.msra.mxu1 %v1344_v55 }
 0x12c   :  { %1347 = vmatprep.subr.bf16.mxu1 %v1346_v58 }
 0x1f1   :  { %v1132_v3 = vpop.f32.mrb[0].mxu1 }
 0x1f2   :  { %v1133_v5 = vpop.f32.mrb[1].mxu1 }
 0x1f3   :  { %v1134_v6 = vadd.f32 %v1133_v5, %v1132_v3 }
 0x1f5   :  { %v299_v11 = vadd.f32 %v1134_v6, %v1087_v4 }
 0x1f7   :  { %v302_v13 = vmax.f32 %v299_v11, 0.0 }
 0x1f9   :  { %1088 = vmatmul.mubr.msk.f32.vlgmr.msra.gmra.mrb[2].mxu1 %vm357_vm1, %v302_v13 }
 0x1fa   :  { %1349 = vmatpush1.bf16.msra.mxu1 %v1348_v12  ;;  %496 = vmatprep.mubr.f32.mxu1 %v1438_v59  ;;  %v347_v12 = vsub.s32 2, %v1796_v22 }
 0x1fb   :  { %1351 = vmatprep.subr.bf16.mxu1 %v1350_v14 }
 0x1fe   :  { %1353 = vmatpush1.bf16.msra.mxu1 %v1352_v18 }
 0x1ff   :  { %1355 = vmatprep.subr.bf16.mxu1 %v1354_v19 }
 0x202   :  { %1357 = vmatpush1.bf16.msra.mxu1 %v1356_v27 }
 0x203   :  { %1359 = vmatprep.subr.bf16.mxu1 %v1358_v28 }
 0x206   :  { %1361 = vmatpush1.bf16.msra.mxu1 %v1360_v31 }
 0x207   :  { %1362 = vmatprep.subr.bf16.mxu1 %v1439_v63 }
 0x209   :  { %1089 = vmatmul.mubr.msk.f32.vlgmr.msra.gmra.mrb[4].mxu1 %vm357_vm1, %v302_v13  ;;  %v348_v13 = vrot.slane %v1944_v34, %v347_v12 }
 0x20a   :  { %1364 = vmatpush3.bf16.msra.mxu1 %v1862_v62  ;;  %1174 = vmatprep.mubr.msk.f32.mxu1 %vm1440_vm0, %v1438_v59 }
 0x20b   :  { %1365 = vmatprep.subr.bf16.mxu1 %v1439_v63 }
 0x20e   :  { %1367 = vmatpush3.bf16.msra.mxu1 %v1873_v2 }
 0x20f   :  { %1368 = vmatprep.subr.bf16.mxu1 %v1439_v63 }
 0x211   :  { %1175 = vmatmul.mubr.f32.vlgmr.msra.gmra.mrb[6].mxu1 %v1438_v59 }
 0x212   :  { %1370 = vmatpush3.bf16.msra.mxu1 %v1862_v62  ;;  %1185 = vmatprep.mubr.msk.f32.mxu1 %vm1440_vm0, %v1438_v59 }
 0x213   :  { %1371 = vmatprep.subr.bf16.mxu1 %v1439_v63 }
 0x216   :  { %1373 = vmatpush3.bf16.msra.mxu1 %v1873_v2 }
 0x217   :  { %1380 = vmatprep.subr.bf16.mxu1 %v1439_v63 }
 0x2cc   :  { %v427_v32 = vpop.f32.mrb[2].mxu1 }
 0x2cd   :  { %v429_v33 = vpop.f32.mrb[3].mxu1  ;;  %v428_v38 = vadd.f32 %v427_v32, %v340_v37 }
 0x2ce   :  { %v430_v57 = vadd.f32 %v429_v33, %v344_v56 }
 0x2dc   :  { %v1946_v35 = vpop.f32.mrb[4].mxu1 }
 0x2dd   :  { %v1948_v36 = vpop.f32.mrb[5].mxu1  ;;  %v499_v14 = vadd.f32 %v1946_v35, %v348_v13  ;;  %v351_v35 = vsub.s32 3, %v1796_v22 }
 0x2df   :  { %v352_v37 = vrot.slane %v1944_v34, %v351_v35 }
 0x2e4   :  { %v577_v39 = vpop.f32.mrb[6].mxu1 }
 0x2e5   :  { %v581_v40 = vadd.f32 %v577_v39, %v428_v38  ;;  %v1176_v41 = vpop.f32.mrb[7].mxu1  ;;  %v501_v38 = vadd.f32 %v1948_v36, %v352_v37 }
 0x2e7   :  { %1404 = vtanh.f32 %v581_v40  ;;  %v1090_v44 = vmul.f32 -1.442695, %v581_v40 }
 0x2e9   :  { %1406 = vpow2.f32 %v1090_v44 }
 0x2f1   :  { %v1405_v42 = vpop.eup %1404 }
 0x2f2   :  { %591 = vrot.lane.b32.xlu0 %v1405_v42, %s1441_s1 }
 0x2f3   :  { %v1407_v45 = vpop.eup %1406 }
 0x2f4   :  { %v585_v46 = vadd.f32 1.0, %v1407_v45 }
 0x2f6   :  { %1408 = vrcp.f32 %v585_v46 }
 0x300   :  { %v1409_v47 = vpop.eup %1408 }
 0x301   :  { %v589_v23 = vmul.f32 0.0, %v1409_v47 }
 0x364   :  { %v592_v48 = vpop.permute.xlu0 %591 }
 0x365   :  { %v594_v49 = vmul.f32 %v1409_v47, %v592_v48 }
 0x367   :  { %596 = vrot.lane.b32.xlu0 %v594_v49, %s1442_s4  ;;  %v911_v49 = vld [vmem:[%s2035_s6] sm:$0xff] }
 0x3d9   :  { %v597_v50 = vpop.permute.xlu0 %596 }
 0x3da   :  { %v599_v51 = vadd.f32 %v597_v50, %v589_v23  ;;  %v912_v23 = vld [vmem:[%s2035_s6 + $0x8] sm:$0xff]  ;;  %v913_v50 = vld [vmem:[%s2035_s6 + $0x10] sm:$0xff] }
 0x3dc   :  { %1410 = vtanh.f32 %v599_v51 }
 0x3e6   :  { %v1411_v52 = vpop.eup %1410 }
 0x3e7   :  { %602 = vrot.lane.b32.xlu1 %v1411_v52, %s1441_s1  ;;  %v914_v52 = vld [vmem:[%s2035_s6 + $0x18] sm:$0xff] }
 0x459   :  { %v603_v53 = vpop.permute.xlu1 %602 }
 0x45a   :  { %v605_v54 = vmul.f32 %v1409_v47, %v603_v53  ;;  %v1390_v53 = vpack.c.bf16 %v914_v52, %v913_v50 }
 0x45c   :  { %607 = vrot.lane.b32.xlu1 %v605_v54, %s1442_s4  ;;  %v915_v54 = vld [vmem:[%s2035_s6 + $0x20] sm:$0xff] }
 0x4ce   :  { %v608_v55 = vpop.permute.xlu1 %607 }
 0x4cf   :  { %1186 = vmatmul.mubr.msk.f32.vlgmr.msra.gmra.mrb[8].mxu1 %vm507_vm2, %v608_v55  ;;  %v916_v55 = vld [vmem:[%s2035_s6 + $0x28] sm:$0xff] }
 0x4d0   :  { %1382 = vmatpush3.bf16.msra.mxu1 %v1862_v62  ;;  %1207 = vmatprep.mubr.msk.f32.mxu1 %vm1440_vm0, %v1438_v59  ;;  %v1393_v56 = vpack.c.bf16 %v916_v55, %v915_v54 }
 0x4d1   :  { %1383 = vmatprep.subr.bf16.mxu1 %v1439_v63 }
 0x4d4   :  { %1385 = vmatpush3.bf16.msra.mxu1 %v1873_v2 }
 0x4d5   :  { %1229 = vmatprep.subr.mxu1 %v1438_v59 }
 0x5a2   :  { %v677_v58 = vpop.f32.mrb[8].mxu1 }
 0x5a3   :  { %v681_v60 = vadd.f32 %v677_v58, %v430_v57  ;;  %v1187_v61 = vpop.f32.mrb[9].mxu1  ;;  %v917_v57 = vld [vmem:[%s2035_s6 + $0x30] sm:$0xff]  ;;  %v918_v58 = vld [vmem:[%s2035_s6 + $0x38] sm:$0xff] }
 0x5a4   :  { %v1396_v61 = vpack.c.bf16 %v918_v58, %v917_v57 }
 0x5a5   :  { %1412 = vtanh.f32 %v681_v60  ;;  %v1092_v62 = vmul.f32 -1.442695, %v681_v60 }
 0x5a7   :  { %1414 = vpow2.f32 %v1092_v62 }
 0x5af   :  { %v1413_v0 = vpop.eup %1412 }
 0x5b0   :  { %691 = vrot.lane.b32.xlu0 %v1413_v0, %s1441_s1 }
 0x5b1   :  { %v1415_v1 = vpop.eup %1414 }
 0x5b2   :  { %v685_v3 = vadd.f32 1.0, %v1415_v1 }
 0x5b4   :  { %1416 = vrcp.f32 %v685_v3 }
 0x5be   :  { %v1417_v2 = vpop.eup %1416 }
 0x5bf   :  { %v689_v6 = vmul.f32 %v1417_v2, %v599_v51  ;;  %v1387_v51 = vpack.c.bf16 %v912_v23, %v911_v49 }
 0x622   :  { %v692_v4 = vpop.permute.xlu0 %691 }
 0x623   :  { %v694_v5 = vmul.f32 %v1417_v2, %v692_v4  ;;  %v1097_v4 = vld [vmem:[%s2037_s7] ss:$0 sm:$0xff] }
 0x625   :  { %696 = vrot.lane.b32.xlu1 %v694_v5, %s1442_s4 }
 0x697   :  { %v697_v25 = vpop.permute.xlu1 %696 }
 0x698   :  { %v699_v7 = vadd.f32 %v697_v25, %v689_v6 }
 0x69a   :  { %1418 = vtanh.f32 %v699_v7 }
 0x6a4   :  { %v1419_v8 = vpop.eup %1418 }
 0x6a5   :  { %702 = vrot.lane.b32.xlu0 %v1419_v8, %s1441_s1 }
 0x717   :  { %v703_v9 = vpop.permute.xlu0 %702 }
 0x718   :  { %v705_v10 = vmul.f32 %v1417_v2, %v703_v9  ;;  %v1000_v2 = vld [vmem:[%s2036_s8] sm:$0xff] }
 0x71a   :  { %707 = vrot.lane.b32.xlu1 %v705_v10, %s1442_s4 }
 0x78c   :  { %v708_v11 = vpop.permute.xlu1 %707 }
 0x78d   :  { %1197 = vmatmul.mubr.msk.f32.vlgmr.msra.gmra.mrb[2].mxu0 %vm507_vm2, %v708_v11 }
 0x78e   :  { %1226 = vmatprep.mubr.msk.f32.mxu0 %vm1440_vm0, %v1438_v59  ;;  %1388 = vmatpush3.bf16.msra.mxu0 %v1387_v51 }
 0x78f   :  { %1389 = vmatprep.subr.bf16.mxu0 %v1439_v63 }
 0x792   :  { %1391 = vmatpush3.bf16.msra.mxu0 %v1390_v53 }
 0x793   :  { %1392 = vmatprep.subr.bf16.mxu0 %v1439_v63 }
 0x796   :  { %1394 = vmatpush3.bf16.msra.mxu0 %v1393_v56 }
 0x797   :  { %1395 = vmatprep.subr.bf16.mxu0 %v1439_v63 }
 0x79a   :  { %1397 = vmatpush3.bf16.msra.mxu0 %v1396_v61 }
 0x860   :  { %v777_v15 = vpop.f32.mrb[2].mxu0 }
 0x861   :  { %v781_v43 = vadd.f32 %v777_v15, %v499_v14  ;;  %v1198_v16 = vpop.f32.mrb[3].mxu0 }
 0x863   :  { %1420 = vtanh.f32 %v781_v43  ;;  %v1094_v18 = vmul.f32 -1.442695, %v781_v43 }
 0x865   :  { %1422 = vpow2.f32 %v1094_v18 }
 0x86d   :  { %v1421_v17 = vpop.eup %1420 }
 0x86e   :  { %791 = vrot.lane.b32.xlu0 %v1421_v17, %s1441_s1 }
 0x86f   :  { %v1423_v19 = vpop.eup %1422 }
 0x870   :  { %v785_v20 = vadd.f32 1.0, %v1423_v19 }
 0x872   :  { %1424 = vrcp.f32 %v785_v20 }
 0x87c   :  { %v1425_v21 = vpop.eup %1424 }
 0x87d   :  { %v789_v27 = vmul.f32 %v1425_v21, %v699_v7 }
 0x8e0   :  { %v792_v24 = vpop.permute.xlu0 %791 }
 0x8e1   :  { %v794_v26 = vmul.f32 %v1425_v21, %v792_v24 }
 0x8e3   :  { %796 = vrot.lane.b32.xlu1 %v794_v26, %s1442_s4 }
 0x955   :  { %v797_v28 = vpop.permute.xlu1 %796 }
 0x956   :  { %v799_v29 = vadd.f32 %v797_v28, %v789_v27 }
 0x958   :  { %1426 = vtanh.f32 %v799_v29 }
 0x962   :  { %v1427_v30 = vpop.eup %1426 }
 0x963   :  { %802 = vrot.lane.b32.xlu0 %v1427_v30, %s1441_s1 }
 0x9d5   :  { %v803_v31 = vpop.permute.xlu0 %802 }
 0x9d6   :  { %v805_v32 = vmul.f32 %v1425_v21, %v803_v31 }
 0x9d8   :  { %807 = vrot.lane.b32.xlu1 %v805_v32, %s1442_s4 }
 0xa4a   :  { %v808_v33 = vpop.permute.xlu1 %807 }
 0xa4b   :  { %1208 = vmatmul.mubr.msk.f32.vlgmr.msra.gmra.mrb[10].mxu1 %vm507_vm2, %v808_v33 }
 0xa4c   :  { %1231 = vmatprep.mubr.msk.f32.mxu1 %vm1440_vm0, %v1438_v59  ;;  %1230 = vmatpush3.msra.mxu1 %v1000_v2 }
 0xb1e   :  { %v877_v39 = vpop.f32.mrb[10].mxu1 }
 0xb1f   :  { %v881_v40 = vadd.f32 %v877_v39, %v501_v38  ;;  %v1209_v41 = vpop.f32.mrb[11].mxu1 }
 0xb21   :  { %1428 = vtanh.f32 %v881_v40  ;;  %v1096_v44 = vmul.f32 -1.442695, %v881_v40 }
 0xb23   :  { %1430 = vpow2.f32 %v1096_v44 }
 0xb2b   :  { %v1429_v42 = vpop.eup %1428 }
 0xb2c   :  { %891 = vrot.lane.b32.xlu0 %v1429_v42, %s1441_s1 }
 0xb2d   :  { %v1431_v45 = vpop.eup %1430 }
 0xb2e   :  { %v885_v46 = vadd.f32 1.0, %v1431_v45 }
 0xb30   :  { %1432 = vrcp.f32 %v885_v46 }
 0xb3a   :  { %v1433_v47 = vpop.eup %1432 }
 0xb3b   :  { %v889_v22 = vmul.f32 %v1433_v47, %v799_v29 }
 0xb9e   :  { %v892_v59 = vpop.permute.xlu0 %891 }
 0xb9f   :  { %v894_v48 = vmul.f32 %v1433_v47, %v892_v59 }
 0xba1   :  { %896 = vrot.lane.b32.xlu1 %v894_v48, %s1442_s4 }
 0xc13   :  { %v897_v34 = vpop.permute.xlu1 %896 }
 0xc14   :  { %v899_v36 = vadd.f32 %v897_v34, %v889_v22 }
 0xc16   :  { %1434 = vtanh.f32 %v899_v36 }
 0xc20   :  { %v1435_v60 = vpop.eup %1434 }
 0xc21   :  { %902 = vrot.lane.b32.xlu0 %v1435_v60, %s1441_s1 }
 0xc93   :  { %v903_v0 = vpop.permute.xlu0 %902 }
 0xc94   :  { %v905_v62 = vmul.f32 %v1433_v47, %v903_v0 }
 0xc96   :  { %907 = vrot.lane.b32.xlu1 %v905_v62, %s1442_s4 }
 0xd08   :  { %v908_v1 = vpop.permute.xlu1 %907 }
 0xd09   :  { %v910_v3 = vsel %vm507_vm2, %v908_v1, %v899_v36 }
 0xd0a   :  { %1227 = vmatmul.mubr.msk.f32.vlgmr.msra.gmra.mrb[4].mxu0 %vm357_vm1, %v910_v3 }
 0xddd   :  { %v995_v63 = vpop.f32.mrb[4].mxu0 }
 0xdde   :  { %v996_v5 = vadd.f32 %v1097_v4, %v995_v63  ;;  %v1228_v6 = vpop.f32.mrb[5].mxu0 }
 0xde0   :  { %1436 = vtanh.f32 %v996_v5 }
 0xdea   :  { %v1437_v25 = vpop.eup %1436 }
 0xdeb   :  { %1232 = vmatmul.mubr.msk.f32.vlgmr.msra.gmra.mrb[12].mxu1 %vm1001_vm3, %v1437_v25 }
 0xebe   :  { %v1071_v7 = vpop.f32.mrb[12].mxu1 }
 0xebf   :  { %1076 = vrot.lane.b32.xlu0 %v1071_v7, %s1443_s30  ;;  %v1233_v8 = vpop.f32.mrb[13].mxu1 }
 0xf31   :  { %v1077_v9 = vpop.permute.xlu0 %1076 }
 0xf32   :  { %v1079_v10 = vsel %vm1001_vm3, %v1437_v25, %v1077_v9 }
 0xf33   :  { %1081 = vst.msk [vmem:[%s2038_s9] sm:$0x3] %vm1080_vm4, %v1079_v10 }

</bundles_post_ra>
